<compile_context>
chip_gen: v5e
topology: v5e:2x2
jax: 0.10.0
libtpu: 0.0.40
codegen_flags: <defaults>
</compile_context>

<pallas_src>
import functools
import math

import jax
import jax.numpy as jnp
from jax.experimental import pallas as pl
from jax.experimental.pallas import tpu as pltpu

_LANES = 128
_TARGET_BLOCK_BYTES = 8 * 1024 * 1024   # ~8 MiB per block (review: v7x per-step overhead < 10%)
_VMEM_LIMIT_BYTES = 48 * 1024 * 1024    # 2 bufs x (in + out) x 8 MiB = 32 MiB, plus headroom
_MIN_SPLIT_BYTES = 4 * 1024 * 1024      # only force an even/balanced grid (for v7x's 2 TCs) above this
_MIN_PALLAS_BYTES = 256 * 1024          # below this, let XLA fuse the activation into its producer


def _lrelu_kernel(x_ref, o_ref, *, c: float):
    x = x_ref[...]
    dt = x.dtype
    c_ = jnp.asarray(c, dt)
    if 0.0 <= c <= 1.0:
        # leaky_relu(x, c) == max(x, c*x) when 0 <= c <= 1: drops the compare+select.
        y = jnp.maximum(x, x * c_)
    else:
        y = jnp.where(x >= jnp.asarray(0, dt), x, x * c_)
    # clamp to [-3, 3]
    o_ref[...] = jnp.maximum(jnp.minimum(y, jnp.asarray(3.0, dt)), jnp.asarray(-3.0, dt))


def _sublane_multiple(dtype) -> int:
    itemsize = jnp.dtype(dtype).itemsize
    return {4: 8, 2: 16, 1: 32}.get(itemsize, 8)


def _round_up(n: int, m: int) -> int:
    return (n + m - 1) // m * m


def _num_steps(total_bytes: int) -> int:
    nsteps = max(1, pl.cdiv(total_bytes, _TARGET_BLOCK_BYTES))
    if total_bytes >= _MIN_SPLIT_BYTES:
        # Even number of near-equal steps so v7x's two TensorCores get balanced shards
        # (each shard >= 2 MiB). On 1-TC v5e/v6e the extra step is negligible vs. DMA time.
        nsteps = _round_up(nsteps, 2)
    return nsteps


def lrelu_ref(x: jax.Array, c: float = 1.0 / 3) -> jax.Array:
    """Pure-JAX reference matching torch.clamp(F.leaky_relu(x, c), -3, 3)."""
    return jnp.clip(jnp.where(x >= 0, x, x * c), -3.0, 3.0)


def lrelu(x: jax.Array, c: float = 1.0 / 3, *, min_pallas_bytes: int = _MIN_PALLAS_BYTES) -> jax.Array:
    """clamp(leaky_relu(x, c), -3, 3) elementwise via a Pallas TPU kernel (with small-size fallback)."""
    orig_shape = x.shape
    dtype = x.dtype
    total = int(math.prod(orig_shape)) if orig_shape else 1
    itemsize = jnp.dtype(dtype).itemsize
    total_bytes = total * itemsize
    sub = _sublane_multiple(dtype)
    granule = sub * _LANES  # smallest native packed tile, in elements

    is_float = jnp.issubdtype(dtype, jnp.floating)
    if (not is_float) or total_bytes < min_pallas_bytes or total < granule:
        # Small activations (ZForcing's actual sizes) / degenerate cases: a standalone
        # elementwise kernel would cost an extra full HBM read+write that XLA fusion avoids.
        if is_float:
            return lrelu_ref(x, c)
        # Integer-ish dtypes: compute in f32 so c=1/3 does not truncate to 0 in-dtype.
        return lrelu_ref(x.astype(jnp.float32), c).astype(dtype)

    compiler_params = pltpu.CompilerParams(
        # TODO(synk): on v7x, verify in xprof whether "parallel" activates both TensorCores or
        # whether CORE_PARALLEL is required; "parallel" is the safe default on all generations.
        dimension_semantics=("parallel",),
        vmem_limit_bytes=_VMEM_LIMIT_BYTES,
    )
    kernel = functools.partial(_lrelu_kernel, c=float(c))
    nsteps = _num_steps(total_bytes)

    if total % _LANES == 0:
        # Lane-dense (rows, 128) slab. No sublane padding: the ragged last block (if rows is not
        # a multiple of block_rows) is handled by Pallas's masked OOB writes.
        rows = total // _LANES
        block_rows = min(_round_up(pl.cdiv(rows, nsteps), sub), (rows // sub) * sub)
        grid = (pl.cdiv(rows, block_rows),)
        x2d = x.reshape(rows, _LANES)
        out = pl.pallas_call(
            kernel,
            out_shape=jax.ShapeDtypeStruct((rows, _LANES), dtype),
            grid_spec=pltpu.PrefetchScalarGridSpec(
                num_scalar_prefetch=0,
                grid=grid,
                in_specs=[pl.BlockSpec((block_rows, _LANES), lambda i: (i, 0))],
                out_specs=pl.BlockSpec((block_rows, _LANES), lambda i: (i, 0)),
            ),
            compiler_params=compiler_params,
        )(x2d)
        return out.reshape(orig_shape)

    # Non-128-aligned element count: 1-D layout, block a multiple of sub*128 elements, ceil-div
    # grid. No jnp.pad and no trailing slice: out-of-bounds lanes of the ragged last block read
    # unspecified values, but their writes are masked, so the stored result is unaffected.
    block_elems = min(_round_up(pl.cdiv(total, nsteps), granule), (total // granule) * granule)
    grid = (pl.cdiv(total, block_elems),)
    x1d = x.reshape(total)
    out = pl.pallas_call(
        kernel,
        out_shape=jax.ShapeDtypeStruct((total,), dtype),
        grid_spec=pltpu.PrefetchScalarGridSpec(
            num_scalar_prefetch=0,
            grid=grid,
            in_specs=[pl.BlockSpec((block_elems,), lambda i: (i,))],
            out_specs=pl.BlockSpec((block_elems,), lambda i: (i,)),
        ),
        compiler_params=compiler_params,
    )(x1d)
    return out.reshape(orig_shape)


if __name__ == "__main__":
    key = jax.random.PRNGKey(0)
    k1, k2, k3, k4, k5 = jax.random.split(key, 5)

    # 1) Module-consistent small NCHW activation (ZForcing conv stack; batch=2, C=4, 16x16).
    x_small = jax.random.normal(k1, (2, 4, 16, 16), dtype=jnp.float32) * 5.0
    out_forced = jax.block_until_ready(lrelu(x_small, min_pallas_bytes=0))  # force the Pallas 2D path
    assert out_forced.shape == x_small.shape and out_forced.dtype == x_small.dtype
    assert jnp.allclose(out_forced, lrelu_ref(x_small), atol=1e-6, rtol=1e-6), "mismatch (2D path)"

    out_fused = jax.block_until_ready(lrelu(x_small))  # default: small-size fusion fallback
    assert jnp.allclose(out_fused, lrelu_ref(x_small), atol=1e-6, rtol=1e-6), "mismatch (fallback path)"

    # 2) 128-aligned but non-sublane-aligned rows: exercises the masked ragged last block (no pad).
    x_rag = jax.random.normal(k2, (2, 4, 20, 16), dtype=jnp.float32) * 5.0  # rows = 20
    out_rag = jax.block_until_ready(lrelu(x_rag, min_pallas_bytes=0))
    assert jnp.allclose(out_rag, lrelu_ref(x_rag), atol=1e-6, rtol=1e-6), "mismatch (ragged 2D path)"

    # 3) Larger activations hitting the default Pallas path (>= cutoff), f32 and bf16.
    x_big = jax.random.normal(k3, (2, 64, 32, 32), dtype=jnp.float32) * 5.0  # 512 KiB
    out_big = jax.block_until_ready(lrelu(x_big))
    assert jnp.allclose(out_big, lrelu_ref(x_big), atol=1e-6, rtol=1e-6), "mismatch (large f32)"

    x_bf16 = (jax.random.normal(k4, (2, 64, 64, 64), dtype=jnp.float32) * 5.0).astype(jnp.bfloat16)
    out_bf16 = jax.block_until_ready(lrelu(x_bf16))
    assert out_bf16.dtype == jnp.bfloat16
    assert jnp.allclose(out_bf16.astype(jnp.float32), lrelu_ref(x_bf16).astype(jnp.float32),
                        atol=5e-2, rtol=0), "mismatch (bf16)"

    # 4) Non-128-aligned element count: 1-D no-pad path with a masked ragged last block.
    x_odd = jax.random.normal(k5, (3, 5, 7, 11), dtype=jnp.float32) * 5.0  # 1155 elements
    out_odd = jax.block_until_ready(lrelu(x_odd, min_pallas_bytes=0))
    assert jnp.allclose(out_odd, lrelu_ref(x_odd), atol=1e-6, rtol=1e-6), "mismatch (1D ragged path)"

    # TODO(synk): the rest of ZForcing.forward (Conv2d/ConvTranspose2d stacks, nn.LSTM, LSTMCell,
    # softmax/NLL/KLD losses) is left to XLA; only the LReLU activation module is lowered to Pallas.
    print("KERNEL_OK")
</pallas_src>

<mosaic_0001>
module attributes {stable_mosaic.version = 11 : i64} {
  func.func @_lrelu_kernel(%arg0: i32, %arg1: memref<16x128xf32, #tpu.memory_space<vmem>>, %arg2: memref<16x128xf32, #tpu.memory_space<vmem>>) attributes {dimension_semantics = [#tpu.dimension_semantics<parallel>], iteration_bounds = array<i64: 1>, scalar_prefetch = 0 : i64, scratch_operands = 0 : i64, tpu.core_type = #tpu.core_type<tc>, window_params = [{transform_indices = @transform_0, window_bounds = array<i64: 16, 128>}, {transform_indices = @transform_1, window_bounds = array<i64: 16, 128>}]} {
    %c0 = arith.constant 0 : index
    %c0_0 = arith.constant 0 : index
    %0 = vector.load %arg1[%c0, %c0_0] : memref<16x128xf32, #tpu.memory_space<vmem>>, vector<16x128xf32>
    %cst = arith.constant 0.333333343 : f32
    %1 = vector.broadcast %cst : f32 to vector<16x128xf32>
    %2 = arith.mulf %0, %1 : vector<16x128xf32>
    %3 = arith.maximumf %0, %2 : vector<16x128xf32>
    %cst_1 = arith.constant 3.000000e+00 : f32
    %4 = vector.broadcast %cst_1 : f32 to vector<16x128xf32>
    %5 = arith.minimumf %3, %4 : vector<16x128xf32>
    %cst_2 = arith.constant -3.000000e+00 : f32
    %6 = vector.broadcast %cst_2 : f32 to vector<16x128xf32>
    %7 = arith.maximumf %5, %6 : vector<16x128xf32>
    %c0_3 = arith.constant 0 : index
    %c0_4 = arith.constant 0 : index
    %8 = vector.load %arg2[%c0_3, %c0_4] : memref<16x128xf32, #tpu.memory_space<vmem>>, vector<16x128xf32>
    tpu.vector_store %arg2[%c0_3, %c0_4], %7 {strides = array<i32>} : memref<16x128xf32, #tpu.memory_space<vmem>>, vector<16x128xf32>,
    return
  }
  func.func @transform_0(%arg0: i32) -> (i32, i32) {
    %c0_i32 = arith.constant 0 : i32
    %c0_i32_0 = arith.constant 0 : i32
    return %arg0, %c0_i32 : i32, i32
  }
  func.func @transform_1(%arg0: i32) -> (i32, i32) {
    %c0_i32 = arith.constant 0 : i32
    %c0_i32_0 = arith.constant 0 : i32
    return %arg0, %c0_i32 : i32, i32
  }
}

</mosaic_0001>

<bundles_post_ra>
// kernel: tpu_custom_call.1
= control target key start
LH: loop header
LB: loop body
LE: loop exit
PB: predicated region body
PF: predicated region fallthrough
CT: control target
= control target key end

     0   :  { %6 = vsyncpa [#allocation3], 0  ;;  %s134_s0 = inlined_call_operand.hbm [shape: f32[16,128], index: 0, kind: input, shape index: {}]   ;;  %s135_s1 = inlined_call_operand.hbm [shape: f32[16,128], index: 1, kind: output, shape index: {}]  }
   0x1   :  { %7 = vsyncpa [#allocation4], 0  ;;  %s12_s8 = sshll.u32 %s134_s0, 4  ;;  %s114_s9 = smov [#allocation2]   ;;  %s13_s8 = int_to_ptr.hbm [resolvable:$true] %s12_s8 }
   0x2   :  { %s14_s10 = sshll.u32 %s114_s9, 4  ;;  %s115_s11 = smov 128   ;;  %s15_s10 = int_to_ptr.vmem [resolvable:$true] %s14_s10 }
   0x3   :  { %s116_s12 = smov 8  }
   0x4   :  { %20 = dma.hbm_to_vmem [thread:$0]  %s13_s8, 256, %s15_s10, [#allocation3], %s115_s11, %s115_s11, %s116_s12  }
   0x5   :  { %110 = dma.done.wait [#allocation3], 256  }
   0x6   :  { %111 = vsyncadd [#allocation3], 4294967040  ;;  %v25_v0 = vld [vmem:[#allocation2] sm:$0xff]  ;;  %v26_v1 = vld [vmem:[#allocation2 + $0x8] sm:$0xff]  ;;  %s117_s13 = smov [#allocation5]   ;;  %s43_s0 = sshll.u32 %s135_s1, 4  ;;  %s44_s0 = int_to_ptr.hbm [resolvable:$true] %s43_s0 }
   0x7   :  { %v27_v2 = vmul.f32 0.33333334, %v25_v0  ;;  %v28_v3 = vmul.f32 0.33333334, %v26_v1  ;;  %s41_s14 = sshll.u32 %s117_s13, 4  ;;  %s42_s14 = int_to_ptr.vmem [resolvable:$true] %s41_s14 }
   0x9   :  { %v29_v4 = vmax.f32 %v25_v0, %v27_v2  ;;  %v30_v5 = vmax.f32 %v26_v1, %v28_v3 }
   0xb   :  { %v56_v6 = vclamps-f32 %v29_v4, 3.0  ;;  %v57_v7 = vclamps-f32 %v30_v5, 3.0 }
   0xd   :  { %35 = vst [vmem:[#allocation5] sm:$0xff] %v56_v6 }
   0xe   :  { %36 = vst [vmem:[#allocation5 + $0x8] sm:$0xff] %v57_v7 }
   0xf   :  { %49 = dma.vmem_to_hbm [thread:$0]  %s42_s14, 256, %s44_s0, [#allocation4], %s115_s11, %s115_s11, %s116_s12  }
  0x10   :  { %112 = dma.done.wait [#allocation4], 256  }
  0x11   :  { %113 = vsyncadd [#allocation4], 4294967040 }
  0x12   :  { %54 = vsyncpa [#allocation3], 1 }
  0x13   :  { %55 = vsyncpa [#allocation4], 1 }

</bundles_post_ra>
